<compile_context>
chip_gen: v5e
topology: v5e:2x2
jax: 0.10.0
libtpu: 0.0.40
codegen_flags: <defaults>
</compile_context>

<pallas_src>
import functools
import math

import jax
import jax.numpy as jnp
from jax import lax
from jax.experimental import pallas as pl
from jax.experimental.pallas import tpu as pltpu

LN_EPS = 1e-5  # torch.nn.LayerNorm default


def _round_up(x, m):
    return ((x + m - 1) // m) * m


def _vmem_limit(est_bytes, headroom=1.5):
    # Keep the scoped-VMEM request >= default (32 MiB) and <= 64 MiB so the
    # same request is valid on v5e/v6e (128 MiB physical) and v7x (64 MiB).
    est = int(est_bytes * headroom) + (2 << 20)
    return max(32 << 20, min(64 << 20, est))


def _layer_norm(z, gamma, beta):
    mu = jnp.mean(z, axis=-1, keepdims=True)
    var = jnp.mean((z - mu) ** 2, axis=-1, keepdims=True)
    return (z - mu) * lax.rsqrt(var + LN_EPS) * gamma + beta


# ---------------------------------------------------------------------------
# Kernel 1: multi-head self-attention + W_o + AddNorm1
#   grid = (B, num_q_tiles); fused QKV projection cached per batch in scratch.
# ---------------------------------------------------------------------------
def _attn_addnorm_kernel(num_heads, valid_lens_ref,
                         xf_ref, xq_ref, wqkv_ref, woh_ref, gamma_ref, beta_ref,
                         y_ref, q_scr, k_scr, v_scr):
    b = pl.program_id(0)
    qi = pl.program_id(1)
    S, D = xf_ref.shape                          # full-sequence block (bf16)
    tq = xq_ref.shape[0]                         # query-row tile
    dh = D // num_heads
    cdt = wqkv_ref.dtype                         # bf16 MXU compute dtype
    scale = 1.0 / math.sqrt(dh)

    # ---- once per batch: fused Q/K/V projection, cached in bf16 scratch ----
    @pl.when(qi == 0)
    def _():
        qkv = jnp.dot(xf_ref[...], wqkv_ref[...],
                      preferred_element_type=jnp.float32)        # (S, 3D) f32
        q_scr[0:S, :] = qkv[:, 0:D].astype(cdt)
        k_scr[...] = qkv[:, D:2 * D].astype(cdt)
        v_scr[...] = qkv[:, 2 * D:3 * D].astype(cdt)

    # ---- per query tile: attention + concat-free output projection ----
    valid = valid_lens_ref[b]                                    # SMEM scalar
    mask = lax.broadcasted_iota(jnp.int32, (tq, S), 1) < valid   # key mask

    q_start = pl.multiple_of(qi * tq, tq)
    o_acc = jnp.zeros((tq, D), jnp.float32)
    for h in range(num_heads):                   # static unroll over heads
        hs = h * dh
        qh = q_scr[pl.ds(q_start, tq), pl.ds(hs, dh)]            # (tq, dh) bf16
        kh = k_scr[:, pl.ds(hs, dh)]                             # (S, dh) bf16
        vh = v_scr[:, pl.ds(hs, dh)]                             # (S, dh) bf16
        # scores = qh @ kh^T without materializing the transpose.
        s = lax.dot_general(qh, kh, (((1,), (1,)), ((), ())),
                            preferred_element_type=jnp.float32) * scale
        s = jnp.where(mask, s, jnp.float32(-1e6))                # d2l mask fill
        m = jnp.max(s, axis=-1, keepdims=True)
        e = jnp.exp(s - m)
        p = e * pl.reciprocal(jnp.sum(e, axis=-1, keepdims=True), approx=True)
        pv = jnp.dot(p.astype(cdt), vh, preferred_element_type=jnp.float32)
        # concat-free: accumulate this head's slice of the output projection.
        o_acc = o_acc + jnp.dot(pv.astype(cdt), woh_ref[h],
                                preferred_element_type=jnp.float32)

    # AddNorm1 (dropout = identity in eval mode); math in f32.
    x_res = xq_ref[...].astype(jnp.float32)
    y = _layer_norm(x_res + o_acc, gamma_ref[...], beta_ref[...])
    y_ref[...] = y.astype(y_ref.dtype)


def attention_addnorm(x, valid_lens, wq, wk, wv, wo, gamma, beta, *,
                      num_heads, tq=256, compute_dtype=jnp.bfloat16):
    B, S, D = x.shape
    assert D % num_heads == 0, "num_hiddens must be divisible by num_heads"
    dh = D // num_heads

    w_qkv = jnp.concatenate([wq, wk, wv], axis=1).astype(compute_dtype)  # (D,3D)
    wo_h = wo.reshape(num_heads, dh, D).astype(compute_dtype)            # (H,dh,D)
    gamma2 = gamma.reshape(1, D).astype(jnp.float32)
    beta2 = beta.reshape(1, D).astype(jnp.float32)
    valid_lens = valid_lens.astype(jnp.int32)
    x_c = x.astype(compute_dtype)                # bf16 activations into kernel

    tq_eff = min(tq, _round_up(S, 8))            # cap for tiny demo shapes
    nq = pl.cdiv(S, tq_eff)
    s_pad = nq * tq_eff                          # q-scratch rows (in-bounds reads)

    flops = (B * 2 * S * D * 3 * D                       # fused QKV projection
             + B * num_heads * 4 * S * S * dh            # scores + P@V
             + B * 2 * S * D * D)                        # output projection
    cost = pl.CostEstimate(
        flops=int(flops),
        transcendentals=int(B * num_heads * S * (S + 1) + B * S),
        bytes_accessed=int(2 * (3 * B * S * D) + 2 * (4 * D * D) + 4 * 2 * D),
    )

    vmem_est = (
        2 * S * D * 2 + 2 * tq_eff * D * 2               # x_full, x_q (dbl-buf)
        + 2 * 3 * D * D * 2 + 2 * D * D * 2              # w_qkv, wo_h
        + 2 * tq_eff * D * 2                             # out tile
        + (s_pad + 2 * S) * D * 2                        # q/k/v scratch (bf16)
        + S * 3 * D * 4                                  # qkv f32 intermediate
        + 4 * tq_eff * S * 4 + 3 * tq_eff * D * 4        # softmax / acc temps
    )

    kernel = functools.partial(_attn_addnorm_kernel, num_heads)
    return pl.pallas_call(
        kernel,
        out_shape=jax.ShapeDtypeStruct((B, S, D), compute_dtype),  # bf16 y
        grid_spec=pltpu.PrefetchScalarGridSpec(
            num_scalar_prefetch=1,                       # valid_lens -> SMEM
            grid=(B, nq),
            in_specs=[
                pl.BlockSpec((None, S, D), lambda b, q, vl: (b, 0, 0)),      # X[b] full
                pl.BlockSpec((None, tq_eff, D), lambda b, q, vl: (b, q, 0)), # X[b] q-tile
                pl.BlockSpec((D, 3 * D), lambda b, q, vl: (0, 0)),           # [Wq|Wk|Wv]
                pl.BlockSpec((num_heads, dh, D), lambda b, q, vl: (0, 0, 0)),# Wo per head
                pl.BlockSpec((1, D), lambda b, q, vl: (0, 0)),               # LN gamma1
                pl.BlockSpec((1, D), lambda b, q, vl: (0, 0)),               # LN beta1
            ],
            out_specs=pl.BlockSpec((None, tq_eff, D), lambda b, q, vl: (b, q, 0)),
            scratch_shapes=[
                pltpu.VMEM((s_pad, D), compute_dtype),   # Q cache (per batch)
                pltpu.VMEM((S, D), compute_dtype),       # K cache
                pltpu.VMEM((S, D), compute_dtype),       # V cache
            ],
        ),
        compiler_params=pltpu.CompilerParams(
            dimension_semantics=("parallel", "arbitrary"),
            vmem_limit_bytes=_vmem_limit(vmem_est)),
        cost_estimate=cost,
    )(valid_lens, x_c, x_c, w_qkv, wo_h, gamma2, beta2)


# ---------------------------------------------------------------------------
# Kernel 2: PositionWiseFFN + AddNorm2, tiled over large token row-tiles
# ---------------------------------------------------------------------------
def _ffn_addnorm_kernel(y_ref, w1_ref, b1_ref, w2_ref, b2_ref,
                        gamma_ref, beta_ref, o_ref):
    cdt = w1_ref.dtype                               # bf16 for the MXU
    y_bf = y_ref[...]                                # (tm, D) bf16 activations
    h = jnp.dot(y_bf, w1_ref[...],
                preferred_element_type=jnp.float32) + b1_ref[...]
    h = jnp.maximum(h, 0.0)                          # ReLU in f32
    f = jnp.dot(h.astype(cdt), w2_ref[...],
                preferred_element_type=jnp.float32) + b2_ref[...]
    # AddNorm2 (dropout = identity in eval mode); math in f32.
    o = _layer_norm(y_bf.astype(jnp.float32) + f, gamma_ref[...], beta_ref[...])
    o_ref[...] = o.astype(o_ref.dtype)


def ffn_addnorm(y, w1, b1, w2, b2, gamma, beta, *, tm=512,
                compute_dtype=jnp.bfloat16):
    B, S, D = y.shape
    H = w1.shape[1]
    M = B * S
    # Large row tiles amortize the per-grid-step overhead.  cdiv grid; the
    # ragged last tile is handled by Pallas block masking (LayerNorm is
    # row-wise, so padded junk rows never contaminate valid rows and are
    # masked on writeback) -- no host-side pad/slice HBM round trip.
    tm_eff = min(tm, _round_up(M, 8))
    grid_m = pl.cdiv(M, tm_eff)

    y2 = y.reshape(M, D)                             # bf16, contiguous reshape
    w1c = w1.astype(compute_dtype)
    w2c = w2.astype(compute_dtype)
    b1_2 = b1.reshape(1, H).astype(jnp.float32)
    b2_2 = b2.reshape(1, D).astype(jnp.float32)
    gamma2 = gamma.reshape(1, D).astype(jnp.float32)
    beta2 = beta.reshape(1, D).astype(jnp.float32)

    cost = pl.CostEstimate(
        flops=int(2 * M * (D * H + H * D)),
        transcendentals=int(M),
        bytes_accessed=int(2 * M * D + 4 * M * D + 2 * (D * H + H * D)
                           + 4 * (H + 3 * D)),
    )
    vmem_est = (2 * tm_eff * D * 2 + 2 * tm_eff * D * 4      # in / out tiles
                + 2 * (D * H + H * D) * 2                    # resident weights
                + 2 * (H + 3 * D) * 4
                + 2 * tm_eff * H * 4 + 2 * tm_eff * D * 4)   # f32 temps

    out = pl.pallas_call(
        _ffn_addnorm_kernel,
        out_shape=jax.ShapeDtypeStruct((M, D), jnp.float32),
        grid_spec=pltpu.PrefetchScalarGridSpec(
            num_scalar_prefetch=0,
            grid=(grid_m,),
            in_specs=[
                pl.BlockSpec((tm_eff, D), lambda i: (i, 0)),   # token row tile
                pl.BlockSpec((D, H), lambda i: (0, 0)),        # W1 (resident)
                pl.BlockSpec((1, H), lambda i: (0, 0)),        # b1
                pl.BlockSpec((H, D), lambda i: (0, 0)),        # W2 (resident)
                pl.BlockSpec((1, D), lambda i: (0, 0)),        # b2
                pl.BlockSpec((1, D), lambda i: (0, 0)),        # LN gamma2
                pl.BlockSpec((1, D), lambda i: (0, 0)),        # LN beta2
            ],
            out_specs=pl.BlockSpec((tm_eff, D), lambda i: (i, 0)),
        ),
        compiler_params=pltpu.CompilerParams(
            dimension_semantics=("parallel",),
            vmem_limit_bytes=_vmem_limit(vmem_est)),
        cost_estimate=cost,
    )(y2, w1c, b1_2, w2c, b2_2, gamma2, beta2)

    return out.reshape(B, S, D)


# ---------------------------------------------------------------------------
# Full EncoderBlock forward
# ---------------------------------------------------------------------------
def encoder_block(x, valid_lens, params, *, num_heads, tq=256, tm=512,
                  compute_dtype=jnp.bfloat16):
    B, S, _ = x.shape
    if valid_lens is None:
        valid_lens = jnp.full((B,), S, jnp.int32)
    # TODO(synk): only per-batch (1-D) valid_lens is supported; the d2l
    # masked_softmax 2-D per-query variant is not implemented here.
    y = attention_addnorm(
        x, valid_lens,
        params["wq"], params["wk"], params["wv"], params["wo"],
        params["gamma1"], params["beta1"],
        num_heads=num_heads, tq=tq, compute_dtype=compute_dtype)
    return ffn_addnorm(
        y, params["w1"], params["b1"], params["w2"], params["b2"],
        params["gamma2"], params["beta2"],
        tm=tm, compute_dtype=compute_dtype)


# ---------------------------------------------------------------------------
# Pure-JAX reference (mirrors the kernel's bf16-cast / f32-accumulate recipe,
# including the bf16 activation hand-off between the two kernels)
# ---------------------------------------------------------------------------
def ref_encoder_block(x, valid_lens, params, *, num_heads,
                      compute_dtype=jnp.bfloat16):
    B, S, D = x.shape
    dh = D // num_heads
    scale = 1.0 / math.sqrt(dh)
    f32 = jnp.float32

    def mm(a, w):
        return jnp.dot(a.astype(compute_dtype), w.astype(compute_dtype),
                       preferred_element_type=f32)

    def ln(z, g, b):
        mu = jnp.mean(z, axis=-1, keepdims=True)
        var = jnp.mean((z - mu) ** 2, axis=-1, keepdims=True)
        return (z - mu) * lax.rsqrt(var + LN_EPS) * g + b

    x = x.astype(compute_dtype).astype(f32)      # kernel-1 bf16 input boundary
    q = mm(x, params["wq"])
    k = mm(x, params["wk"])
    v = mm(x, params["wv"])

    def split_heads(t):                          # (B,S,D) -> (B,H,S,dh)
        return t.reshape(B, S, num_heads, dh).transpose(0, 2, 1, 3)

    qh, kh, vh = split_heads(q), split_heads(k), split_heads(v)
    scores = jnp.einsum("bhqd,bhkd->bhqk",
                        qh.astype(compute_dtype), kh.astype(compute_dtype),
                        preferred_element_type=f32) * scale
    kv_pos = lax.broadcasted_iota(jnp.int32, (B, 1, 1, S), 3)
    mask = kv_pos < valid_lens.astype(jnp.int32)[:, None, None, None]
    scores = jnp.where(mask, scores, f32(-1e6))
    m = jnp.max(scores, axis=-1, keepdims=True)
    e = jnp.exp(scores - m)
    p = e / jnp.sum(e, axis=-1, keepdims=True)
    attn = jnp.einsum("bhqk,bhkd->bhqd",
                      p.astype(compute_dtype), vh.astype(compute_dtype),
                      preferred_element_type=f32)
    attn = attn.transpose(0, 2, 1, 3).reshape(B, S, D)
    o = mm(attn, params["wo"])
    y = ln(x + o, params["gamma1"], params["beta1"])
    y = y.astype(compute_dtype).astype(f32)      # inter-kernel bf16 boundary

    h = jnp.maximum(mm(y, params["w1"]) + params["b1"], 0.0)
    f = mm(h, params["w2"]) + params["b2"]
    return ln(y + f, params["gamma2"], params["beta2"])


# ---------------------------------------------------------------------------
# Parameter init (matches torch defaults; Linear weights stored transposed as
# (fan_in, fan_out) so y = x @ W + b equals torch's y = x @ W.T + b)
# ---------------------------------------------------------------------------
def init_encoder_block_params(key, num_hiddens, ffn_num_hiddens):
    ks = jax.random.split(key, 6)

    def linear_w(k, fan_in, fan_out):
        bound = 1.0 / math.sqrt(fan_in)
        return jax.random.uniform(k, (fan_in, fan_out), jnp.float32, -bound, bound)

    def linear_wb(k, fan_in, fan_out):
        kw, kb = jax.random.split(k)
        bound = 1.0 / math.sqrt(fan_in)
        w = jax.random.uniform(kw, (fan_in, fan_out), jnp.float32, -bound, bound)
        b = jax.random.uniform(kb, (fan_out,), jnp.float32, -bound, bound)
        return w, b

    w1, b1 = linear_wb(ks[4], num_hiddens, ffn_num_hiddens)
    w2, b2 = linear_wb(ks[5], ffn_num_hiddens, num_hiddens)
    return dict(
        wq=linear_w(ks[0], num_hiddens, num_hiddens),
        wk=linear_w(ks[1], num_hiddens, num_hiddens),
        wv=linear_w(ks[2], num_hiddens, num_hiddens),
        wo=linear_w(ks[3], num_hiddens, num_hiddens),
        w1=w1, b1=b1, w2=w2, b2=b2,
        gamma1=jnp.ones((num_hiddens,), jnp.float32),
        beta1=jnp.zeros((num_hiddens,), jnp.float32),
        gamma2=jnp.ones((num_hiddens,), jnp.float32),
        beta2=jnp.zeros((num_hiddens,), jnp.float32),
    )


if __name__ == "__main__":
    # Small shapes consistent with the module:
    # batch=2, seq=8, num_hiddens=32, ffn_num_hiddens=64, num_heads=4.
    B, S = 2, 8
    num_hiddens, ffn_num_hiddens, num_heads = 32, 64, 4

    key = jax.random.PRNGKey(0)
    kx, kp = jax.random.split(key)
    x = jax.random.normal(kx, (B, S, num_hiddens), jnp.float32)
    valid_lens = jnp.array([5, 8], jnp.int32)
    params = init_encoder_block_params(kp, num_hiddens, ffn_num_hiddens)

    out = encoder_block(x, valid_lens, params, num_heads=num_heads)
    out = jax.block_until_ready(out)

    ref = ref_encoder_block(x, valid_lens, params, num_heads=num_heads)
    assert out.shape == (B, S, num_hiddens)
    max_err = float(jnp.max(jnp.abs(out - ref)))
    assert jnp.allclose(out, ref, atol=2.5e-2, rtol=2.5e-2), f"max err {max_err}"

    print("KERNEL_OK")
</pallas_src>

<mosaic_0001>
module attributes {stable_mosaic.version = 11 : i64} {
  func.func @_attn_addnorm_kernel(%arg0: i32, %arg1: i32, %arg2: memref<2xi32, #tpu.memory_space<smem>>, %arg3: memref<1x8x32xbf16, #tpu.memory_space<vmem>>, %arg4: memref<1x8x32xbf16, #tpu.memory_space<vmem>>, %arg5: memref<32x96xbf16, #tpu.memory_space<vmem>>, %arg6: memref<4x8x32xbf16, #tpu.memory_space<vmem>>, %arg7: memref<1x32xf32, #tpu.memory_space<vmem>>, %arg8: memref<1x32xf32, #tpu.memory_space<vmem>>, %arg9: memref<1x8x32xbf16, #tpu.memory_space<vmem>>, %arg10: memref<8x32xbf16, #tpu.memory_space<vmem>>, %arg11: memref<8x32xbf16, #tpu.memory_space<vmem>>, %arg12: memref<8x32xbf16, #tpu.memory_space<vmem>>) attributes {dimension_semantics = [#tpu.dimension_semantics<parallel>, #tpu.dimension_semantics<arbitrary>], iteration_bounds = array<i64: 2, 1>, scalar_prefetch = 1 : i64, scratch_operands = 3 : i64, tpu.core_type = #tpu.core_type<tc>, window_params = [{transform_indices = @transform_0, window_bounds = array<i64: 1, 8, 32>}, {transform_indices = @transform_1, window_bounds = array<i64: 1, 8, 32>}, {pipeline_mode = #tpu.pipeline_mode<synchronous>, transform_indices = @transform_2, window_bounds = array<i64: 32, 96>}, {pipeline_mode = #tpu.pipeline_mode<synchronous>, transform_indices = @transform_3, window_bounds = array<i64: 4, 8, 32>}, {pipeline_mode = #tpu.pipeline_mode<synchronous>, transform_indices = @transform_4, window_bounds = array<i64: 1, 32>}, {pipeline_mode = #tpu.pipeline_mode<synchronous>, transform_indices = @transform_5, window_bounds = array<i64: 1, 32>}, {transform_indices = @transform_6, window_bounds = array<i64: 1, 8, 32>}]} {
    %c0_i32 = arith.constant 0 : i32
    %0 = arith.cmpi eq, %arg1, %c0_i32 : i32
    %1 = arith.extui %0 : i1 to i32
    %c0_i32_0 = arith.constant 0 : i32
    %2 = arith.cmpi ne, %1, %c0_i32_0 : i32
    scf.if %2 {
      %c0_69 = arith.constant 0 : index
      %c0_70 = arith.constant 0 : index
      %c0_71 = arith.constant 0 : index
      %147 = vector.load %arg3[%c0_69, %c0_70, %c0_71] : memref<1x8x32xbf16, #tpu.memory_space<vmem>>, vector<1x8x32xbf16>
      %148 = vector.shape_cast %147 : vector<1x8x32xbf16> to vector<8x32xbf16>
      %c0_72 = arith.constant 0 : index
      %c0_73 = arith.constant 0 : index
      %149 = vector.load %arg5[%c0_72, %c0_73] : memref<32x96xbf16, #tpu.memory_space<vmem>>, vector<32x96xbf16>
      %cst_74 = arith.constant dense<0.000000e+00> : vector<8x96xf32>
      %150 = tpu.matmul %148, %149, %cst_74 {dimension_numbers = #tpu.dot_dimension_numbers<[1], [0], [0], [1], [0, 0, 1, 1], [], []>} : vector<8x32xbf16>, vector<32x96xbf16>, vector<8x96xf32> -> vector<8x96xf32>
      %151 = vector.extract_strided_slice %150 {offsets = [0, 0], sizes = [8, 32], strides = [1, 1]} : vector<8x96xf32> to vector<8x32xf32>
      %152 = arith.truncf %151 : vector<8x32xf32> to vector<8x32xbf16>
      %c0_75 = arith.constant 0 : index
      %c0_76 = arith.constant 0 : index
      %153 = vector.load %arg10[%c0_75, %c0_76] : memref<8x32xbf16, #tpu.memory_space<vmem>>, vector<8x32xbf16>
      tpu.vector_store %arg10[%c0_75, %c0_76], %152 {strides = array<i32>} : memref<8x32xbf16, #tpu.memory_space<vmem>>, vector<8x32xbf16>,
      %154 = vector.extract_strided_slice %150 {offsets = [0, 32], sizes = [8, 32], strides = [1, 1]} : vector<8x96xf32> to vector<8x32xf32>
      %155 = arith.truncf %154 : vector<8x32xf32> to vector<8x32xbf16>
      %c0_77 = arith.constant 0 : index
      %c0_78 = arith.constant 0 : index
      %156 = vector.load %arg11[%c0_77, %c0_78] : memref<8x32xbf16, #tpu.memory_space<vmem>>, vector<8x32xbf16>
      tpu.vector_store %arg11[%c0_77, %c0_78], %155 {strides = array<i32>} : memref<8x32xbf16, #tpu.memory_space<vmem>>, vector<8x32xbf16>,
      %157 = vector.extract_strided_slice %150 {offsets = [0, 64], sizes = [8, 32], strides = [1, 1]} : vector<8x96xf32> to vector<8x32xf32>
      %158 = arith.truncf %157 : vector<8x32xf32> to vector<8x32xbf16>
      %c0_79 = arith.constant 0 : index
      %c0_80 = arith.constant 0 : index
      %159 = vector.load %arg12[%c0_79, %c0_80] : memref<8x32xbf16, #tpu.memory_space<vmem>>, vector<8x32xbf16>
      tpu.vector_store %arg12[%c0_79, %c0_80], %158 {strides = array<i32>} : memref<8x32xbf16, #tpu.memory_space<vmem>>, vector<8x32xbf16>,
    } else {
    }
    %3 = arith.index_cast %arg0 : i32 to index
    %4 = memref.load %arg2[%3] : memref<2xi32, #tpu.memory_space<smem>>
    %5 = tpu.iota {dimensions = array<i32: 1>} : vector<8x8xi32>
    %6 = vector.broadcast %4 : i32 to vector<8x8xi32>
    %7 = arith.cmpi slt, %5, %6 : vector<8x8xi32>
    %c8_i32 = arith.constant 8 : i32
    %8 = arith.muli %arg1, %c8_i32 : i32
    %9 = tpu.assume_multiple %8, 8 : i32
    %cst = arith.constant 0.000000e+00 : f32
    %10 = vector.broadcast %cst : f32 to vector<8x32xf32>
    %11 = arith.index_cast %9 : i32 to index
    %c0 = arith.constant 0 : index
    %12 = vector.load %arg10[%11, %c0] : memref<8x32xbf16, #tpu.memory_space<vmem>>, vector<8x8xbf16>
    %c0_1 = arith.constant 0 : index
    %c0_2 = arith.constant 0 : index
    %13 = vector.load %arg11[%c0_1, %c0_2] : memref<8x32xbf16, #tpu.memory_space<vmem>>, vector<8x8xbf16>
    %c0_3 = arith.constant 0 : index
    %c0_4 = arith.constant 0 : index
    %14 = vector.load %arg12[%c0_3, %c0_4] : memref<8x32xbf16, #tpu.memory_space<vmem>>, vector<8x8xbf16>
    %cst_5 = arith.constant dense<0.000000e+00> : vector<8x8xf32>
    %15 = tpu.matmul %12, %13, %cst_5 {dimension_numbers = #tpu.dot_dimension_numbers<[1], [1], [0], [0], [0, 0, 1, 0], [], []>} : vector<8x8xbf16>, vector<8x8xbf16>, vector<8x8xf32> -> vector<8x8xf32>
    %cst_6 = arith.constant 0.353553385 : f32
    %16 = vector.broadcast %cst_6 : f32 to vector<8x8xf32>
    %17 = arith.mulf %15, %16 : vector<8x8xf32>
    %cst_7 = arith.constant -1.000000e+06 : f32
    %18 = vector.broadcast %cst_7 : f32 to vector<8x8xf32>
    %19 = arith.select %7, %17, %18 : vector<8x8xi1>, vector<8x8xf32>
    %cst_8 = arith.constant dense<0xFF800000> : vector<8xf32>
    %20 = vector.multi_reduction <maximumf>, %19, %cst_8 [1] : vector<8x8xf32> to vector<8xf32>
    %21 = vector.shape_cast %20 : vector<8xf32> to vector<8x1xf32>
    %22 = vector.broadcast %21 : vector<8x1xf32> to vector<8x8xf32>
    %23 = arith.subf %19, %22 : vector<8x8xf32>
    %24 = math.exp %23 : vector<8x8xf32>
    %cst_9 = arith.constant dense<0.000000e+00> : vector<8xf32>
    %25 = vector.multi_reduction <add>, %24, %cst_9 [1] : vector<8x8xf32> to vector<8xf32>
    %26 = vector.shape_cast %25 : vector<8xf32> to vector<8x1xf32>
    %27 = tpu.reciprocal %26 {approx = true} : vector<8x1xf32> -> vector<8x1xf32>
    %28 = vector.broadcast %27 : vector<8x1xf32> to vector<8x8xf32>
    %29 = arith.mulf %24, %28 : vector<8x8xf32>
    %30 = arith.truncf %29 : vector<8x8xf32> to vector<8x8xbf16>
    %cst_10 = arith.constant dense<0.000000e+00> : vector<8x8xf32>
    %31 = tpu.matmul %30, %14, %cst_10 {dimension_numbers = #tpu.dot_dimension_numbers<[1], [0], [0], [1], [0, 0, 1, 1], [], []>} : vector<8x8xbf16>, vector<8x8xbf16>, vector<8x8xf32> -> vector<8x8xf32>
    %32 = arith.truncf %31 : vector<8x8xf32> to vector<8x8xbf16>
    %c0_11 = arith.constant 0 : index
    %c0_12 = arith.constant 0 : index
    %c0_13 = arith.constant 0 : index
    %33 = vector.load %arg6[%c0_11, %c0_12, %c0_13] : memref<4x8x32xbf16, #tpu.memory_space<vmem>>, vector<1x8x32xbf16>
    %34 = vector.shape_cast %33 : vector<1x8x32xbf16> to vector<8x32xbf16>
    %cst_14 = arith.constant dense<0.000000e+00> : vector<8x32xf32>
    %35 = tpu.matmul %32, %34, %cst_14 {dimension_numbers = #tpu.dot_dimension_numbers<[1], [0], [0], [1], [0, 0, 1, 1], [], []>} : vector<8x8xbf16>, vector<8x32xbf16>, vector<8x32xf32> -> vector<8x32xf32>
    %36 = arith.addf %10, %35 : vector<8x32xf32>
    %37 = arith.index_cast %9 : i32 to index
    %c8 = arith.constant 8 : index
    %38 = vector.load %arg10[%37, %c8] : memref<8x32xbf16, #tpu.memory_space<vmem>>, vector<8x8xbf16>
    %c0_15 = arith.constant 0 : index
    %c8_16 = arith.constant 8 : index
    %39 = vector.load %arg11[%c0_15, %c8_16] : memref<8x32xbf16, #tpu.memory_space<vmem>>, vector<8x8xbf16>
    %c0_17 = arith.constant 0 : index
    %c8_18 = arith.constant 8 : index
    %40 = vector.load %arg12[%c0_17, %c8_18] : memref<8x32xbf16, #tpu.memory_space<vmem>>, vector<8x8xbf16>
    %cst_19 = arith.constant dense<0.000000e+00> : vector<8x8xf32>
    %41 = tpu.matmul %38, %39, %cst_19 {dimension_numbers = #tpu.dot_dimension_numbers<[1], [1], [0], [0], [0, 0, 1, 0], [], []>} : vector<8x8xbf16>, vector<8x8xbf16>, vector<8x8xf32> -> vector<8x8xf32>
    %cst_20 = arith.constant 0.353553385 : f32
    %42 = vector.broadcast %cst_20 : f32 to vector<8x8xf32>
    %43 = arith.mulf %41, %42 : vector<8x8xf32>
    %cst_21 = arith.constant -1.000000e+06 : f32
    %44 = vector.broadcast %cst_21 : f32 to vector<8x8xf32>
    %45 = arith.select %7, %43, %44 : vector<8x8xi1>, vector<8x8xf32>
    %cst_22 = arith.constant dense<0xFF800000> : vector<8xf32>
    %46 = vector.multi_reduction <maximumf>, %45, %cst_22 [1] : vector<8x8xf32> to vector<8xf32>
    %47 = vector.shape_cast %46 : vector<8xf32> to vector<8x1xf32>
    %48 = vector.broadcast %47 : vector<8x1xf32> to vector<8x8xf32>
    %49 = arith.subf %45, %48 : vector<8x8xf32>
    %50 = math.exp %49 : vector<8x8xf32>
    %cst_23 = arith.constant dense<0.000000e+00> : vector<8xf32>
    %51 = vector.multi_reduction <add>, %50, %cst_23 [1] : vector<8x8xf32> to vector<8xf32>
    %52 = vector.shape_cast %51 : vector<8xf32> to vector<8x1xf32>
    %53 = tpu.reciprocal %52 {approx = true} : vector<8x1xf32> -> vector<8x1xf32>
    %54 = vector.broadcast %53 : vector<8x1xf32> to vector<8x8xf32>
    %55 = arith.mulf %50, %54 : vector<8x8xf32>
    %56 = arith.truncf %55 : vector<8x8xf32> to vector<8x8xbf16>
    %cst_24 = arith.constant dense<0.000000e+00> : vector<8x8xf32>
    %57 = tpu.matmul %56, %40, %cst_24 {dimension_numbers = #tpu.dot_dimension_numbers<[1], [0], [0], [1], [0, 0, 1, 1], [], []>} : vector<8x8xbf16>, vector<8x8xbf16>, vector<8x8xf32> -> vector<8x8xf32>
    %58 = arith.truncf %57 : vector<8x8xf32> to vector<8x8xbf16>
    %c1 = arith.constant 1 : index
    %c0_25 = arith.constant 0 : index
    %c0_26 = arith.constant 0 : index
    %59 = vector.load %arg6[%c1, %c0_25, %c0_26] : memref<4x8x32xbf16, #tpu.memory_space<vmem>>, vector<1x8x32xbf16>
    %60 = vector.shape_cast %59 : vector<1x8x32xbf16> to vector<8x32xbf16>
    %cst_27 = arith.constant dense<0.000000e+00> : vector<8x32xf32>
    %61 = tpu.matmul %58, %60, %cst_27 {dimension_numbers = #tpu.dot_dimension_numbers<[1], [0], [0], [1], [0, 0, 1, 1], [], []>} : vector<8x8xbf16>, vector<8x32xbf16>, vector<8x32xf32> -> vector<8x32xf32>
    %62 = arith.addf %36, %61 : vector<8x32xf32>
    %63 = arith.index_cast %9 : i32 to index
    %c16 = arith.constant 16 : index
    %64 = vector.load %arg10[%63, %c16] : memref<8x32xbf16, #tpu.memory_space<vmem>>, vector<8x8xbf16>
    %c0_28 = arith.constant 0 : index
    %c16_29 = arith.constant 16 : index
    %65 = vector.load %arg11[%c0_28, %c16_29] : memref<8x32xbf16, #tpu.memory_space<vmem>>, vector<8x8xbf16>
    %c0_30 = arith.constant 0 : index
    %c16_31 = arith.constant 16 : index
    %66 = vector.load %arg12[%c0_30, %c16_31] : memref<8x32xbf16, #tpu.memory_space<vmem>>, vector<8x8xbf16>
    %cst_32 = arith.constant dense<0.000000e+00> : vector<8x8xf32>
    %67 = tpu.matmul %64, %65, %cst_32 {dimension_numbers = #tpu.dot_dimension_numbers<[1], [1], [0], [0], [0, 0, 1, 0], [], []>} : vector<8x8xbf16>, vector<8x8xbf16>, vector<8x8xf32> -> vector<8x8xf32>
    %cst_33 = arith.constant 0.353553385 : f32
    %68 = vector.broadcast %cst_33 : f32 to vector<8x8xf32>
    %69 = arith.mulf %67, %68 : vector<8x8xf32>
    %cst_34 = arith.constant -1.000000e+06 : f32
    %70 = vector.broadcast %cst_34 : f32 to vector<8x8xf32>
    %71 = arith.select %7, %69, %70 : vector<8x8xi1>, vector<8x8xf32>
    %cst_35 = arith.constant dense<0xFF800000> : vector<8xf32>
    %72 = vector.multi_reduction <maximumf>, %71, %cst_35 [1] : vector<8x8xf32> to vector<8xf32>
    %73 = vector.shape_cast %72 : vector<8xf32> to vector<8x1xf32>
    %74 = vector.broadcast %73 : vector<8x1xf32> to vector<8x8xf32>
    %75 = arith.subf %71, %74 : vector<8x8xf32>
    %76 = math.exp %75 : vector<8x8xf32>
    %cst_36 = arith.constant dense<0.000000e+00> : vector<8xf32>
    %77 = vector.multi_reduction <add>, %76, %cst_36 [1] : vector<8x8xf32> to vector<8xf32>
    %78 = vector.shape_cast %77 : vector<8xf32> to vector<8x1xf32>
    %79 = tpu.reciprocal %78 {approx = true} : vector<8x1xf32> -> vector<8x1xf32>
    %80 = vector.broadcast %79 : vector<8x1xf32> to vector<8x8xf32>
    %81 = arith.mulf %76, %80 : vector<8x8xf32>
    %82 = arith.truncf %81 : vector<8x8xf32> to vector<8x8xbf16>
    %cst_37 = arith.constant dense<0.000000e+00> : vector<8x8xf32>
    %83 = tpu.matmul %82, %66, %cst_37 {dimension_numbers = #tpu.dot_dimension_numbers<[1], [0], [0], [1], [0, 0, 1, 1], [], []>} : vector<8x8xbf16>, vector<8x8xbf16>, vector<8x8xf32> -> vector<8x8xf32>
    %84 = arith.truncf %83 : vector<8x8xf32> to vector<8x8xbf16>
    %c2 = arith.constant 2 : index
    %c0_38 = arith.constant 0 : index
    %c0_39 = arith.constant 0 : index
    %85 = vector.load %arg6[%c2, %c0_38, %c0_39] : memref<4x8x32xbf16, #tpu.memory_space<vmem>>, vector<1x8x32xbf16>
    %86 = vector.shape_cast %85 : vector<1x8x32xbf16> to vector<8x32xbf16>
    %cst_40 = arith.constant dense<0.000000e+00> : vector<8x32xf32>
    %87 = tpu.matmul %84, %86, %cst_40 {dimension_numbers = #tpu.dot_dimension_numbers<[1], [0], [0], [1], [0, 0, 1, 1], [], []>} : vector<8x8xbf16>, vector<8x32xbf16>, vector<8x32xf32> -> vector<8x32xf32>
    %88 = arith.addf %62, %87 : vector<8x32xf32>
    %89 = arith.index_cast %9 : i32 to index
    %c24 = arith.constant 24 : index
    %90 = vector.load %arg10[%89, %c24] : memref<8x32xbf16, #tpu.memory_space<vmem>>, vector<8x8xbf16>
    %c0_41 = arith.constant 0 : index
    %c24_42 = arith.constant 24 : index
    %91 = vector.load %arg11[%c0_41, %c24_42] : memref<8x32xbf16, #tpu.memory_space<vmem>>, vector<8x8xbf16>
    %c0_43 = arith.constant 0 : index
    %c24_44 = arith.constant 24 : index
    %92 = vector.load %arg12[%c0_43, %c24_44] : memref<8x32xbf16, #tpu.memory_space<vmem>>, vector<8x8xbf16>
    %cst_45 = arith.constant dense<0.000000e+00> : vector<8x8xf32>
    %93 = tpu.matmul %90, %91, %cst_45 {dimension_numbers = #tpu.dot_dimension_numbers<[1], [1], [0], [0], [0, 0, 1, 0], [], []>} : vector<8x8xbf16>, vector<8x8xbf16>, vector<8x8xf32> -> vector<8x8xf32>
    %cst_46 = arith.constant 0.353553385 : f32
    %94 = vector.broadcast %cst_46 : f32 to vector<8x8xf32>
    %95 = arith.mulf %93, %94 : vector<8x8xf32>
    %cst_47 = arith.constant -1.000000e+06 : f32
    %96 = vector.broadcast %cst_47 : f32 to vector<8x8xf32>
    %97 = arith.select %7, %95, %96 : vector<8x8xi1>, vector<8x8xf32>
    %cst_48 = arith.constant dense<0xFF800000> : vector<8xf32>
    %98 = vector.multi_reduction <maximumf>, %97, %cst_48 [1] : vector<8x8xf32> to vector<8xf32>
    %99 = vector.shape_cast %98 : vector<8xf32> to vector<8x1xf32>
    %100 = vector.broadcast %99 : vector<8x1xf32> to vector<8x8xf32>
    %101 = arith.subf %97, %100 : vector<8x8xf32>
    %102 = math.exp %101 : vector<8x8xf32>
    %cst_49 = arith.constant dense<0.000000e+00> : vector<8xf32>
    %103 = vector.multi_reduction <add>, %102, %cst_49 [1] : vector<8x8xf32> to vector<8xf32>
    %104 = vector.shape_cast %103 : vector<8xf32> to vector<8x1xf32>
    %105 = tpu.reciprocal %104 {approx = true} : vector<8x1xf32> -> vector<8x1xf32>
    %106 = vector.broadcast %105 : vector<8x1xf32> to vector<8x8xf32>
    %107 = arith.mulf %102, %106 : vector<8x8xf32>
    %108 = arith.truncf %107 : vector<8x8xf32> to vector<8x8xbf16>
    %cst_50 = arith.constant dense<0.000000e+00> : vector<8x8xf32>
    %109 = tpu.matmul %108, %92, %cst_50 {dimension_numbers = #tpu.dot_dimension_numbers<[1], [0], [0], [1], [0, 0, 1, 1], [], []>} : vector<8x8xbf16>, vector<8x8xbf16>, vector<8x8xf32> -> vector<8x8xf32>
    %110 = arith.truncf %109 : vector<8x8xf32> to vector<8x8xbf16>
    %c3 = arith.constant 3 : index
    %c0_51 = arith.constant 0 : index
    %c0_52 = arith.constant 0 : index
    %111 = vector.load %arg6[%c3, %c0_51, %c0_52] : memref<4x8x32xbf16, #tpu.memory_space<vmem>>, vector<1x8x32xbf16>
    %112 = vector.shape_cast %111 : vector<1x8x32xbf16> to vector<8x32xbf16>
    %cst_53 = arith.constant dense<0.000000e+00> : vector<8x32xf32>
    %113 = tpu.matmul %110, %112, %cst_53 {dimension_numbers = #tpu.dot_dimension_numbers<[1], [0], [0], [1], [0, 0, 1, 1], [], []>} : vector<8x8xbf16>, vector<8x32xbf16>, vector<8x32xf32> -> vector<8x32xf32>
    %114 = arith.addf %88, %113 : vector<8x32xf32>
    %c0_54 = arith.constant 0 : index
    %c0_55 = arith.constant 0 : index
    %c0_56 = arith.constant 0 : index
    %115 = vector.load %arg4[%c0_54, %c0_55, %c0_56] : memref<1x8x32xbf16, #tpu.memory_space<vmem>>, vector<1x8x32xbf16>
    %116 = vector.shape_cast %115 : vector<1x8x32xbf16> to vector<8x32xbf16>
    %117 = arith.extf %116 : vector<8x32xbf16> to vector<8x32xf32>
    %118 = arith.addf %117, %114 : vector<8x32xf32>
    %c0_57 = arith.constant 0 : index
    %c0_58 = arith.constant 0 : index
    %119 = vector.load %arg7[%c0_57, %c0_58] : memref<1x32xf32, #tpu.memory_space<vmem>>, vector<1x32xf32>
    %c0_59 = arith.constant 0 : index
    %c0_60 = arith.constant 0 : index
    %120 = vector.load %arg8[%c0_59, %c0_60] : memref<1x32xf32, #tpu.memory_space<vmem>>, vector<1x32xf32>
    %cst_61 = arith.constant dense<0.000000e+00> : vector<8xf32>
    %121 = vector.multi_reduction <add>, %118, %cst_61 [1] : vector<8x32xf32> to vector<8xf32>
    %122 = vector.shape_cast %121 : vector<8xf32> to vector<8x1xf32>
    %cst_62 = arith.constant 3.200000e+01 : f32
    %123 = vector.broadcast %cst_62 : f32 to vector<8x1xf32>
    %124 = arith.divf %122, %123 : vector<8x1xf32>
    %125 = vector.broadcast %124 : vector<8x1xf32> to vector<8x32xf32>
    %126 = arith.subf %118, %125 : vector<8x32xf32>
    %127 = arith.mulf %126, %126 : vector<8x32xf32>
    %cst_63 = arith.constant dense<0.000000e+00> : vector<8xf32>
    %128 = vector.multi_reduction <add>, %127, %cst_63 [1] : vector<8x32xf32> to vector<8xf32>
    %129 = vector.shape_cast %128 : vector<8xf32> to vector<8x1xf32>
    %cst_64 = arith.constant 3.200000e+01 : f32
    %130 = vector.broadcast %cst_64 : f32 to vector<8x1xf32>
    %131 = arith.divf %129, %130 : vector<8x1xf32>
    %132 = vector.broadcast %124 : vector<8x1xf32> to vector<8x32xf32>
    %133 = arith.subf %118, %132 : vector<8x32xf32>
    %cst_65 = arith.constant 9.99999974E-6 : f32
    %134 = vector.broadcast %cst_65 : f32 to vector<8x1xf32>
    %135 = arith.addf %131, %134 : vector<8x1xf32>
    %136 = math.rsqrt %135 : vector<8x1xf32>
    %137 = vector.broadcast %136 : vector<8x1xf32> to vector<8x32xf32>
    %138 = arith.mulf %133, %137 : vector<8x32xf32>
    %139 = vector.broadcast %119 : vector<1x32xf32> to vector<8x32xf32>
    %140 = arith.mulf %138, %139 : vector<8x32xf32>
    %141 = vector.broadcast %120 : vector<1x32xf32> to vector<8x32xf32>
    %142 = arith.addf %140, %141 : vector<8x32xf32>
    %143 = arith.truncf %142 : vector<8x32xf32> to vector<8x32xbf16>
    %c0_66 = arith.constant 0 : index
    %c0_67 = arith.constant 0 : index
    %c0_68 = arith.constant 0 : index
    %144 = vector.load %arg9[%c0_66, %c0_67, %c0_68] : memref<1x8x32xbf16, #tpu.memory_space<vmem>>, vector<1x8x32xbf16>
    %145 = vector.shape_cast %144 : vector<1x8x32xbf16> to vector<8x32xbf16>
    %146 = vector.shape_cast %143 : vector<8x32xbf16> to vector<1x8x32xbf16>
    tpu.vector_store %arg9[%c0_66, %c0_67, %c0_68], %146 {strides = array<i32>} : memref<1x8x32xbf16, #tpu.memory_space<vmem>>, vector<1x8x32xbf16>,
    return
  }
  func.func @transform_0(%arg0: i32, %arg1: i32, %arg2: memref<2xi32, #tpu.memory_space<smem>>) -> (i32, i32, i32) {
    %c0_i32 = arith.constant 0 : i32
    %c0_i32_0 = arith.constant 0 : i32
    %c0_i32_1 = arith.constant 0 : i32
    return %arg0, %c0_i32, %c0_i32_0 : i32, i32, i32
  }
  func.func @transform_1(%arg0: i32, %arg1: i32, %arg2: memref<2xi32, #tpu.memory_space<smem>>) -> (i32, i32, i32) {
    %c0_i32 = arith.constant 0 : i32
    %c0_i32_0 = arith.constant 0 : i32
    return %arg0, %arg1, %c0_i32 : i32, i32, i32
  }
  func.func @transform_2(%arg0: i32, %arg1: i32, %arg2: memref<2xi32, #tpu.memory_space<smem>>) -> (i32, i32) {
    %c0_i32 = arith.constant 0 : i32
    %c0_i32_0 = arith.constant 0 : i32
    %c0_i32_1 = arith.constant 0 : i32
    return %c0_i32, %c0_i32_0 : i32, i32
  }
  func.func @transform_3(%arg0: i32, %arg1: i32, %arg2: memref<2xi32, #tpu.memory_space<smem>>) -> (i32, i32, i32) {
    %c0_i32 = arith.constant 0 : i32
    %c0_i32_0 = arith.constant 0 : i32
    %c0_i32_1 = arith.constant 0 : i32
    %c0_i32_2 = arith.constant 0 : i32
    return %c0_i32, %c0_i32_0, %c0_i32_1 : i32, i32, i32
  }
  func.func @transform_4(%arg0: i32, %arg1: i32, %arg2: memref<2xi32, #tpu.memory_space<smem>>) -> (i32, i32) {
    %c0_i32 = arith.constant 0 : i32
    %c0_i32_0 = arith.constant 0 : i32
    %c0_i32_1 = arith.constant 0 : i32
    return %c0_i32, %c0_i32_0 : i32, i32
  }
  func.func @transform_5(%arg0: i32, %arg1: i32, %arg2: memref<2xi32, #tpu.memory_space<smem>>) -> (i32, i32) {
    %c0_i32 = arith.constant 0 : i32
    %c0_i32_0 = arith.constant 0 : i32
    %c0_i32_1 = arith.constant 0 : i32
    return %c0_i32, %c0_i32_0 : i32, i32
  }
  func.func @transform_6(%arg0: i32, %arg1: i32, %arg2: memref<2xi32, #tpu.memory_space<smem>>) -> (i32, i32, i32) {
    %c0_i32 = arith.constant 0 : i32
    %c0_i32_0 = arith.constant 0 : i32
    return %arg0, %arg1, %c0_i32 : i32, i32, i32
  }
}

</mosaic_0001>

<bundles_post_ra>
// kernel: tpu_custom_call.1
= control target key start
LH: loop header
LB: loop body
LE: loop exit
PB: predicated region body
PF: predicated region fallthrough
CT: control target
= control target key end

     0   :  { %s1336_s27 = smov [#allocation6]   ;;  %s1630_s0 = inlined_call_operand.hbm [shape: s32[2], index: 0, kind: input, shape index: {}]   ;;  %s1631_s1 = inlined_call_operand.hbm [shape: bf16[2,8,32], index: 1, kind: input, shape index: {}]   ;;  %s1632_s2 = inlined_call_operand.hbm [shape: bf16[2,8,32], index: 2, kind: input, shape index: {}]   ;;  %s1633_s3 = inlined_call_operand.hbm [shape: bf16[32,96], index: 3, kind: input, shape index: {}]   ;;  %s1634_s4 = inlined_call_operand.hbm [shape: bf16[4,8,32], index: 4, kind: input, shape index: {}]   ;;  %s1635_s5 = inlined_call_operand.vmem [shape: f32[1,32], index: 5, kind: input, shape index: {}]   ;;  %s1636_s6 = inlined_call_operand.vmem [shape: f32[1,32], index: 6, kind: input, shape index: {}]   ;;  %s1637_s7 = inlined_call_operand.hbm [shape: bf16[2,8,32], index: 7, kind: output, shape index: {}]  }
   0x1   :  { %1642 = sst [smem:[#allocation27_spill]] %s1633_s3  ;;  %s13_s26 = sshll.u32 %s1630_s0, 4  ;;  %s14_s26 = int_to_ptr.hbm [resolvable:$true] %s13_s26 }
   0x2   :  { %1643 = sst [smem:[#allocation28_spill]] %s1634_s4 }
   0x3   :  { %16 = dma.hbm_to_smem %s14_s26, 16, %s1336_s27, [#allocation5] }
   0x4   :  { %1290 = dma.done.wait [#allocation5], 16 }
   0x5   :  { %1291 = vsyncadd [#allocation5], 4294967280 }
   0x6   :  { %19 = sfence }
   0x7   :  { %20 = vsyncpa [#allocation8], 0 }
   0x8   :  { %22 = vsyncpa [#allocation8 + $0x1], 0 }
   0x9   :  { %23 = vsyncpa [#allocation11], 0 }
   0xa   :  { %25 = vsyncpa [#allocation11 + $0x1], 0 }
   0xb   :  { %26 = vsyncpa [#allocation14], 0 }
   0xc   :  { %27 = vsyncpa [#allocation9], 0 }
   0xd   :  { %29 = vsyncpa [#allocation9 + $0x1], 0  ;;  %s1390_s28 = smov 0   ;;  %s1392_s29 = smov 0  }
   0xe   :  { %s1394_s30 = smov 0   ;;  %s1396_s0 = smov 0  }
   0xf   :  { %s1398_s8 = smov 0   ;;  %s1400_s9 = smov 0  }
  0x10 LB: > { %1644 = sst [smem:[#allocation22_spill]] %s1322_s30  ;;  %s1421_s10 = sadd.s32 4294967295, %s1334_s9   ;;  %s1334_s9 = sphi %s1400_s9, %s35_s9   ;;  %s1330_s8 = sphi %s1398_s8, %s1662_s8   ;;  %s1326_s0 = sphi %s1396_s0, %s1661_s0   ;;  %s1322_s30 = sphi %s1394_s30, %s1660_s30   ;;  %s1318_s29 = sphi %s1392_s29, %s1664_s29   ;;  %s1314_s28 = sphi %s1390_s28, %s1663_s28  }
  0x11   : > { %1645 = sst [smem:[#allocation23_spill]] %s1330_s8  ;;  %p946_p0 = scmp.ge.s32.totalorder %s1334_s9, 1 }
  0x12   : > { %p68_p1 = scmp.eq.s32.totalorder %s1421_s10, 0  ;;  %p218_p2 = scmp.lt.s32.totalorder %s1334_s9, 3 }
  0x13   : > { %s1646_s3 = sld [smem:[#allocation27_spill]]  ;;  %s1337_s15 = smov [#allocation12]  }
  0x14   : > { %p1429_p3 = pnand %p946_p0, %p218_p2  ;;  %s231_s16 = sshll.u32 %s1337_s15, 4  ;;  %s232_s16 = int_to_ptr.vmem [resolvable:$true] %s231_s16 }
  0x15   : > { %p949_p6 = scmp.ge.s32.totalorder %s1334_s9, 2  ;;  %s1648_s4 = sld [smem:[#allocation28_spill]] }
  0x16   : > { %p1001_p4 = pneg %p1429_p3  ;;  %s1338_s20 = smov 64  }
  0x17   : > { %s1339_s21 = smov 4   ;;  %s1340_s22 = smov [#allocation13]  }
  0x18   : > { %p1002_p5 = pnand %p1001_p4, %p68_p1  ;;  %s245_s23 = sshll.u32 %s1340_s22, 4  ;;  %s246_s23 = int_to_ptr.vmem [resolvable:$true] %s245_s23 }
  0x19   : > { %s229_s13 = sshll.u32 %s1646_s3, 4  ;;  %s945_s24 = sadd.s32 4294967294, %s1334_s9   ;;  %s230_s13 = int_to_ptr.hbm [resolvable:$true] %s229_s13 }
  0x1a   : > { %1004 = dma.hbm_to_vmem [thread:$0]  (!%p1002_p5), %s230_s13, 256, %s232_s16, [#allocation11], %s1338_s20, %s1338_s20, %s1339_s21  }
  0x1b   : > { %s243_s19 = sshll.u32 %s1648_s4, 4  ;;  %s47_s25 = sadd.s32 1, %s1330_s8  ;;  %s244_s19 = int_to_ptr.hbm [resolvable:$true] %s243_s19 }
  0x1c   : > { %1007 = dma.hbm_to_vmem [thread:$0]  (!%p1002_p5), %s244_s19, 256, %s246_s23, [#allocation14], %s1338_s20, %s1338_s20, %s1339_s21  }
  0x1d   : > { %p49_p7 = scmp.ge.s32.totalorder %s47_s25, 2  ;;  %s54_s26 = sadd.s32 1, %s1322_s30 }
  0x1e   : > { %p61_p8 = scmp.ne.s32.totalorder %s1322_s30, %s1318_s29  ;;  %p62_p9 = scmp.eq.s32.totalorder %s1334_s9, 0 }
  0x1f   : > { %s1666_s25 = smov (%p49_p7, %s47_s25), 0  ;;  %p67_p11 = scmp.ne.s32.totalorder %s1318_s29, %s1314_s28 }
  0x20   : > { %1649 = sst [smem:[#allocation24_spill]] %s1666_s25  ;;  %p1449_p10 = por %p62_p9, %p61_p8 }
  0x21   : > { %s51_s11 = ssub.s32 %s1330_s8, %s1666_s25  ;;  %p205_p12 = scmp.eq.s32.totalorder %s1421_s10, 1 }
  0x22   : > { %p52_p13 = scmp.eq.s32.totalorder %s51_s11, 0  ;;  %p1460_p0 = por %p68_p1, %p67_p11 }
  0x23   : > { %p1464_p2 = por %p205_p12, %p61_p8  ;;  %p211_p4 = scmp.eq.s32.totalorder %s945_s24, 1 }
  0x24   : > { %s1469_s15 = scalar_select %p52_p13, %s1322_s30, %s54_s26  }
  0x25   : > { %p1471_p5 = por %p211_p4, %p67_p11  ;;  %p1021_p7 = scmp.lt.s32.totalorder %s1334_s9, 2 }
  0x26   : > { %1653 = sst [smem:[#allocation25_spill]] %s1469_s15  ;;  %s265_s17 = sand.u32 1, %s1322_s30  }
  0x27   : > { %s1654_s16 = scalar_select %p1471_p5, 1, 0 }
  0x28   : > { %s951_s18 = sshll.u32 %s1330_s8, 2  ;;  %s950_s19 = sshll.u32 %s265_s17, 2 }
  0x29   : > { %1655 = sst [smem:[#allocation26_spill]] %s1654_s16  ;;  %s273_s22 = scalar_lea.hbm %s1631_s1, %s951_s18 }
  0x2a   : > { %s275_s23 = sshll.u32 %s273_s22, 4  ;;  %s269_s11 = scalar_lea.vmem [#allocation7], %s950_s19  ;;  %s276_s23 = int_to_ptr.hbm [resolvable:$true] %s275_s23 }
  0x2b   : > { %s277_s3 = sshll.u32 %s269_s11, 4  ;;  %p1009_p8 = pnand %p1021_p7, %p1449_p10  ;;  %s278_s3 = int_to_ptr.vmem [resolvable:$true] %s277_s3 }
  0x2c   : > { %s293_s4 = scalar_lea.hbm %s1632_s2, %s951_s18  ;;  %s284_s25 = sand.u32 1, %s1334_s9  }
  0x2d   : > { %s266_s15 = scalar_lea.sflag [#allocation8], %s265_s17  ;;  %s295_s8 = sshll.u32 %s293_s4, 4  ;;  %s296_s8 = int_to_ptr.hbm [resolvable:$true] %s295_s8 }
  0x2e   : > { %1011 = dma.hbm_to_vmem [thread:$0]  (!%p1009_p8), %s276_s23, 64, %s278_s3, %s266_s15  }
  0x2f   : > { %s288_s30 = scalar_lea.vmem [#allocation10], %s950_s19  ;;  %s285_s20 = scalar_lea.sflag [#allocation11], %s284_s25 }
  0x30   : > { %s297_s16 = sshll.u32 %s288_s30, 4  ;;  %306 = sbr.rel (%p1429_p3) target bundleno = 1804 (0x70c), region = 44  ;;  %s298_s16 = int_to_ptr.vmem [resolvable:$true] %s297_s16 }
  0x31   : > { %1014 = dma.hbm_to_vmem [thread:$0]  (!%p1009_p8), %s296_s8, 64, %s298_s16, %s285_s20  }
  0x32   : > { %s1490_s27 = sand.u32 (!%p1429_p3), 1, %s1318_s29  }
  0x33   : > { %s1493_s18 = sshll.u32 (!%p1429_p3), %s1490_s27, 2  ;;  %s309_s3 = scalar_lea.sflag (!%p1429_p3), [#allocation8], %s1490_s27 }
  0x34   : > { %s312_s4 = scalar_lea.vmem (!%p1429_p3), [#allocation7], %s1493_s18 }
  0x35   : > { %1293 = dma.done.wait (%p1460_p0), %s309_s3, 64  }
  0x36   : > { %1295 = vsyncadd (%p1460_p0), %s309_s3, 4294967232  ;;  %s318_s30 = sand.u32 1, %s1421_s10   ;;  %s322_s14 = scalar_lea.vmem [#allocation10], %s1493_s18 }
  0x37   : > { %s319_s8 = scalar_lea.sflag [#allocation11], %s318_s30 }
  0x38   : > { %1297 = dma.done.wait (%p1460_p0), %s319_s8, 64  }
  0x39   : > { %1299 = vsyncadd (%p1460_p0), %s319_s8, 4294967232 }
  0x3a   : > { %1301 = dma.done.wait (%p68_p1), [#allocation11], 256  }
  0x3b   : > { %1303 = vsyncadd (%p68_p1), [#allocation11], 4294967040 }
  0x3c   : > { %1305 = dma.done.wait (%p68_p1), [#allocation14], 256  }
  0x3d   : > { %1307 = vsyncadd (%p68_p1), [#allocation14], 4294967040  ;;  %v986_v0 = vld [vmem:[#allocation12 + $0x8] sm:$0xff]  ;;  %v985_v1 = vld [vmem:[#allocation12] sm:$0xff]  ;;  %vm389_vm0 = vcmask 261120   ;;  %vm407_vm1 = vcmask 257024   ;;  %v419_v26 = vlaneseq }
  0x3e   : > { %399 = vmatpush.bf16.msra.mxu0 %v986_v0  ;;  %v372_v2 = vld [vmem:[%s312_s4] sm:$0xf]  ;;  %s1341_s25 = smov 64   ;;  %s1342_s12 = smov 96   ;;  %vm468_vm2 = vcmask 1043456   ;;  %vm431_vm3 = vcmask 64512  }
  0x3f   : > { %s1343_s10 = smov 120   ;;  %s1344_s15 = smov 112   ;;  %v486_v17 = vld [vmem:[#allocation13] sm:$0xf]  ;;  %v420_v28 = vand.u32 127, %v419_v26 }
  0x40   : > { %s1345_s16 = smov 104   ;;  %v580_v18 = vsel %vm468_vm2, %v486_v17, 0  ;;  %s418_s17 = sld [smem:[#allocation6 + %s1326_s0]]  ;;  %v556_v31 = vld [vmem:[#allocation13 + $0x4] sm:$0xf] }
  0x41   : > { %s982_s19 = sshll.u32 %s1326_s0, 2  ;;  %s366_s3 = scalar_lea.vmem [#allocation15], %s1493_s18 }
  0x42   : > { %400 = vmatpush.bf16.msra.mxu0 %v985_v1  ;;  %s815_s20 = scalar_lea.hbm %s1637_s7, %s982_s19  ;;  %s817_s0 = sshll.u32 %s366_s3, 4  ;;  %s818_s0 = int_to_ptr.vmem [resolvable:$true] %s817_s0 }
  0x43   : > { %s819_s4 = sshll.u32 %s815_s20, 4  ;;  %s804_s30 = scalar_lea.sflag [#allocation9], %s1490_s27  ;;  %s820_s4 = int_to_ptr.hbm [resolvable:$true] %s819_s4 }
  0x44   : > { %s1252_s8 = sshra.s32 %s820_s4, 4  ;;  %s1258_s18 = scalar_lea.hbm %s1637_s7, 8  ;;  %s1253_s8 = int_to_ptr.hbm [resolvable:$true] %s1252_s8 }
  0x45   : > { %968 = vmatmul.msk.bf16.vlgmr.msra.gmra.mxu0 %vm389_vm0, %v372_v2  ;;  %p1259_p10 = scmp.lt.s32.totalorder %s1253_s8, %s1637_s7 }
  0x46   : > { %v421_v29 = vstv %s418_s17 }
  0x47   : > { %vm1538_vm4 = vcmp.lt.s32.totalorder %v420_v28, %v421_v29 }
  0xc2   : > { %v402_v3 = vpop.f32.mrf.mxu0 }
  0xc3   : > { %v406_v4 = vpack.c.bf16 %v402_v3, %v402_v3 }
  0xc5   : > { %408 = vst.msk [vmem:[#allocation2] sm:$0xf] %vm407_vm1, %v406_v4  ;;  %414 = vrot.lane.b32.xlu1 %v406_v4, %s1341_s25  ;;  %410 = vrot.lane.b32.xlu0 %v406_v4, %s1342_s12 }
  0xca   : > { %v404_v5 = vpop.f32.mrf.mxu0 }
  0xcc   : > { %v428_v14 = vld [vmem:[#allocation2] sm:$0xf] }
  0xcd   : > { %v488_v15 = vunpack.c.l.b16 %v428_v14 }
  0xcf   : > { %v489_v16 = vpack.c.b16 %v488_v15, %v488_v15 }
 0x137   : > { %v415_v6 = vpop.permute.xlu1 %414  ;;  %v411_v7 = vpop.permute.xlu0 %410 }
 0x138   : > { %417 = vst.msk [vmem:[#allocation4] sm:$0xf] %vm407_vm1, %v415_v6 }
 0x139   : > { %413 = vst.msk [vmem:[#allocation3] sm:$0xf] %vm407_vm1, %v411_v7 }
 0x13f   : > { %v1519_v8 = vld [vmem:[#allocation4] sm:$0xf] }
 0x140   : > { %v429_v9 = vld [vmem:[#allocation3] sm:$0xf]  ;;  %v470_v10 = vsel %vm468_vm2, %v1519_v8, 0  ;;  %v531_v51 = vunpack.c.l.b16 %v1519_v8 }
 0x141   : > { %v436_v11 = vsel %vm431_vm3, %v429_v9, 0  ;;  %v493_v12 = vunpack.c.l.b16 %v429_v9  ;;  %479 = vmatpush.bf16.msra.mxu2 %v470_v10 }
 0x142   : > { %445 = vmatpush.bf16.xpose.msra.mxu1 %v436_v11  ;;  %v532_v52 = vpack.c.b16 %v531_v51, %v531_v51 }
 0x143   : > { %v494_v13 = vpack.c.b16 %v493_v12, %v493_v12 }
 0x145   : > { %495 = vrot.lane.b32.xlu2 %v494_v13, %s1343_s10 }
 0x149   : > { %969 = vmatmul.msk.bf16.vlgmr.msra.gmra.mxu1 %vm431_vm3, %v428_v14 }
 0x14a   : > { %589 = vmatpush.bf16.msrb.mxu1 %v580_v18 }
 0x14d   : > { %490 = vrot.lane.b32.xlu2 %v489_v16, %s1343_s10 }
 0x155   : > { %597 = vrot.lane.b32.xlu2 %v494_v13, %s1344_s15 }
 0x15d   : > { %678 = vrot.lane.b32.xlu2 %v494_v13, %s1345_s16 }
 0x165   : > { %595 = vrot.lane.b32.xlu2 %v489_v16, %s1344_s15 }
 0x16d   : > { %676 = vrot.lane.b32.xlu2 %v489_v16, %s1345_s16 }
 0x19f   : > { %v496_v19 = vpop.permute.xlu2 %495 }
 0x1a0   : > { %v501_v20 = vsel %vm431_vm3, %v496_v19, 0 }
 0x1a1   : > { %510 = vmatpush.bf16.xpose.msra.mxu3 %v501_v20 }
 0x1a7   : > { %v491_v21 = vpop.permute.xlu2 %490 }
 0x1a8   : > { %971 = vmatmul.msk.bf16.vlgmr.msra.gmra.mxu3 %vm431_vm3, %v491_v21 }
 0x1af   : > { %v598_v22 = vpop.permute.xlu2 %597 }
 0x1b0   : > { %v603_v23 = vsel %vm431_vm3, %v598_v22, 0 }
 0x1b1   : > { %612 = vmatpush.bf16.xpose.msrb.mxu3 %v603_v23 }
 0x1b7   : > { %v679_v24 = vpop.permute.xlu2 %678 }
 0x1b8   : > { %v684_v25 = vsel %vm431_vm3, %v679_v24, 0 }
 0x1b9   : > { %693 = vmatpush.bf16.xpose.msra.mxu1 %v684_v25 }
 0x1bf   : > { %v596_v27 = vpop.permute.xlu2 %595 }
 0x1c0   : > { %975 = vmatmul.msk.bf16.vlgmr.msrb.gmra.mxu3 %vm431_vm3, %v596_v27 }
 0x1c6   : > { %v447_v30 = vpop.f32.mrf.mxu1 }
 0x1c7   : > { %v451_v32 = vmul.f32 0.35355338, %v447_v30  ;;  %v677_v1 = vpop.permute.xlu2 %676 }
 0x1c9   : > { %v452_v33 = vsel %vm1538_vm4, %v451_v32, -1000000.0  ;;  %v561_v32 = vsel %vm468_vm2, %v556_v31, 0 }
 0x1ca   : > { %v453_v34 = vsel %vm431_vm3, %v452_v33, -inf  ;;  %570 = vmatpush.bf16.msrb.mxu0 %v561_v32 }
 0x1cb   : > { %454 = vmax.xlane.f32.xlu0 %v453_v34 }
 0x1ce   : > { %v449_v35 = vpop.f32.mrf.mxu1 }
 0x22b   : > { %v512_v36 = vpop.f32.mrf.mxu3 }
 0x22c   : > { %v516_v37 = vmul.f32 0.35355338, %v512_v36 }
 0x22e   : > { %v517_v38 = vsel %vm1538_vm4, %v516_v37, -1000000.0 }
 0x22f   : > { %v518_v39 = vsel %vm431_vm3, %v517_v38, -inf }
 0x230   : > { %519 = vmax.xlane.f32.xlu2 %v518_v39 }
 0x233   : > { %v514_v40 = vpop.f32.mrf.mxu3 }
 0x23e   : > { %v455_v41 = vpop.xlane.xlu0 %454 }
 0x23f   : > { %v456_v42 = vsub.f32 %v452_v33, %v455_v41  ;;  %v655_v33 = vld [vmem:[#allocation13 + $0x8] sm:$0xf] }
 0x240   : > { %v660_v35 = vsel %vm468_vm2, %v655_v33, 0 }
 0x241   : > { %v457_v43 = vmul.f32 1.442695, %v456_v42  ;;  %669 = vmatpush.bf16.msra.mxu0 %v660_v35 }
 0x243   : > { %1086 = vpow2.f32 %v457_v43  ;;  %v614_v44 = vpop.f32.mrf.mxu3 }
 0x244   : > { %v618_v47 = vmul.f32 0.35355338, %v614_v44 }
 0x246   : > { %v619_v49 = vsel %vm1538_vm4, %v618_v47, -1000000.0  ;;  %v736_v47 = vld [vmem:[#allocation13 + $0xc] sm:$0xf] }
 0x247   : > { %v620_v50 = vsel %vm431_vm3, %v619_v49, -inf }
 0x249   : > { %v1087_v45 = vpop.eup %1086 }
 0x24a   : > { %v459_v46 = vsel %vm431_vm3, %v1087_v45, 0.0 }
 0x24b   : > { %v616_v48 = vpop.f32.mrf.mxu3  ;;  %460 = vadd.xlane.f32.xlu1 %v459_v46 }
 0x24c   : > { %v741_v48 = vsel %vm468_vm2, %v736_v47, 0 }
 0x253   : > { %621 = vmax.xlane.f32.xlu1 %v620_v50 }
 0x26c   : > { %533 = vrot.lane.b32.xlu1 %v532_v52, %s1343_s10 }
 0x274   : > { %632 = vrot.lane.b32.xlu1 %v532_v52, %s1344_s15 }
 0x2a3   : > { %v520_v3 = vpop.xlane.xlu2 %519 }
 0x2a4   : > { %v521_v5 = vsub.f32 %v517_v38, %v520_v3 }
 0x2a6   : > { %v522_v6 = vmul.f32 1.442695, %v521_v5 }
 0x2be   : > { %v461_v53 = vpop.xlane.xlu1 %460 }
 0x2bf   : > { %1088 = vrcp.f32 %v461_v53 }
 0x2c0   : > { %1090 = vpow2.f32 %v522_v6 }
 0x2c5   : > { %v1089_v54 = vpop.eup %1088 }
 0x2c6   : > { %v463_v55 = vmul.f32 %v1089_v54, %v1087_v45  ;;  %v622_v57 = vpop.xlane.xlu1 %621  ;;  %v1091_v14 = vpop.eup %1090 }
 0x2c7   : > { %v623_v9 = vsub.f32 %v619_v49, %v622_v57  ;;  %v524_v15 = vsel %vm431_vm3, %v1091_v14, 0.0 }
 0x2c8   : > { %v464_v56 = vpack.c.bf16 %v463_v55, %v463_v55 }
 0x2c9   : > { %v624_v12 = vmul.f32 1.442695, %v623_v9 }
 0x2ca   : > { %970 = vmatmul.msk.bf16.vlgmr.msra.gmra.mxu2 %vm431_vm3, %v464_v56 }
 0x2cb   : > { %1092 = vpow2.f32 %v624_v12 }
 0x2d1   : > { %v1093_v16 = vpop.eup %1092 }
 0x2d2   : > { %v626_v17 = vsel %vm431_vm3, %v1093_v16, 0.0 }
 0x2de   : > { %v534_v58 = vpop.permute.xlu1 %533 }
 0x2df   : > { %v539_v59 = vsel %vm468_vm2, %v534_v58, 0  ;;  %v757_v58 = vld [vmem:[%s322_s14] sm:$0xf]  ;;  %s1254_s14 = scalar_lea.hbm %s1253_s8, 4 }
 0x2e0   : > { %548 = vmatpush.bf16.msrb.mxu2 %v539_v59  ;;  %v758_v59 = vunpack.c.l.bf16 %v757_v58  ;;  %p1255_p1 = scmp.ne.s32.totalorder %s1253_s8, %s1254_s14  ;;  %p1260_p11 = scmp.lt.s32.totalorder %s1258_s18, %s1254_s14 }
 0x2e2   : > { %p1256_p3 = pnand %p1255_p1, %p1464_p2  ;;  %p1261_p12 = por %p1260_p11, %p1259_p10 }
 0x2e4   : > { %p1257_p9 = pneg %p1256_p3 }
 0x2e6   : > { %v633_v60 = vpop.permute.xlu1 %632  ;;  %p1262_p13 = pnand %p1261_p12, %p1257_p9 }
 0x2e7   : > { %v638_v61 = vsel %vm468_vm2, %v633_v60, 0 }
 0x2e8   : > { %647 = vmatpush.bf16.msra.mxu2 %v638_v61 }
 0x34d   : > { %v481_v62 = vpop.f32.mrf.mxu2 }
 0x34e   : > { %v485_v63 = vpack.c.bf16 %v481_v62, %v481_v62 }
 0x350   : > { %974 = vmatmul.msk.bf16.vlgmr.msrb.gmra.mxu1 %vm431_vm3, %v485_v63 }
 0x355   : > { %v483_v0 = vpop.f32.mrf.mxu2 }
 0x360   : > { %978 = vmatmul.msk.bf16.vlgmr.msra.gmra.mxu1 %vm431_vm3, %v677_v1  ;;  %v1346_v1 = vmov 32.0  }
 0x3cd   : > { %v1560_v2 = vpop.f32.mrf.mxu1 }
 0x3d5   : > { %v593_v4 = vpop.f32.mrf.mxu1 }
 0x3dd   : > { %v695_v7 = vpop.f32.mrf.mxu1 }
 0x3de   : > { %v699_v8 = vmul.f32 0.35355338, %v695_v7 }
 0x3e0   : > { %v700_v10 = vsel %vm1538_vm4, %v699_v8, -1000000.0 }
 0x3e1   : > { %v701_v11 = vsel %vm431_vm3, %v700_v10, -inf }
 0x3e2   : > { %702 = vmax.xlane.f32.xlu0 %v701_v11 }
 0x3e5   : > { %v697_v13 = vpop.f32.mrf.mxu1 }
 0x3ea   : > { %525 = vadd.xlane.f32.xlu0 %v524_v15 }
 0x3f2   : > { %627 = vadd.xlane.f32.xlu0 %v626_v17 }
 0x455   : > { %v703_v18 = vpop.xlane.xlu0 %702 }
 0x456   : > { %v704_v19 = vsub.f32 %v700_v10, %v703_v18 }
 0x458   : > { %v705_v20 = vmul.f32 1.442695, %v704_v19 }
 0x45a   : > { %1094 = vpow2.f32 %v705_v20 }
 0x45d   : > { %v526_v21 = vpop.xlane.xlu0 %525 }
 0x45e   : > { %1096 = vrcp.f32 %v526_v21 }
 0x460   : > { %v1095_v22 = vpop.eup %1094 }
 0x461   : > { %v707_v23 = vsel %vm431_vm3, %v1095_v22, 0.0 }
 0x462   : > { %708 = vadd.xlane.f32.xlu0 %v707_v23 }
 0x464   : > { %v1097_v24 = vpop.eup %1096 }
 0x465   : > { %v528_v25 = vmul.f32 %v1097_v24, %v1091_v14  ;;  %v628_v26 = vpop.xlane.xlu0 %627  ;;  %v1085_v24 = vld [vmem:[%s1636_s6] ss:$0 sm:$0xff] }
 0x466   : > { %1098 = vrcp.f32 %v628_v26 }
 0x467   : > { %v529_v27 = vpack.c.bf16 %v528_v25, %v528_v25 }
 0x469   : > { %972 = vmatmul.msk.bf16.vlgmr.msrb.gmra.mxu2 %vm431_vm3, %v529_v27 }
 0x46a   : > { %750 = vmatpush.bf16.msrb.mxu2 %v741_v48 }
 0x46c   : > { %v1099_v28 = vpop.eup %1098 }
 0x46d   : > { %v630_v29 = vmul.f32 %v1099_v28, %v1093_v16 }
 0x46f   : > { %v631_v30 = vpack.c.bf16 %v630_v29, %v630_v29 }
 0x476   : > { %713 = vrot.lane.b32.xlu0 %v532_v52, %s1345_s16 }
 0x479   : > { %976 = vmatmul.msk.bf16.vlgmr.msra.gmra.mxu2 %vm431_vm3, %v631_v30 }
 0x4d5   : > { %v709_v34 = vpop.xlane.xlu0 %708 }
 0x4d6   : > { %1100 = vrcp.f32 %v709_v34 }
 0x4d7   : > { %1102 = vrcp.f32 %v1346_v1 }
 0x4dc   : > { %v1101_v36 = vpop.eup %1100 }
 0x4dd   : > { %v711_v37 = vmul.f32 %v1101_v36, %v1095_v22  ;;  %v1103_v3 = vpop.eup %1102  ;;  %v1084_v22 = vld [vmem:[%s1635_s5] ss:$0 sm:$0xff] }
 0x4de   : > { %v767_v4 = vmul.f32 32.0, %v1103_v3  ;;  %vm771_vm5 = vweird.f32 %v1103_v3 }
 0x4df   : > { %v712_v40 = vpack.c.bf16 %v711_v37, %v711_v37 }
 0x4e0   : > { %v768_v5 = vsub.f32 1.0, %v767_v4 }
 0x4e2   : > { %v769_v6 = vmul.f32 %v1103_v3, %v768_v5 }
 0x4e8   : > { %v714_v38 = vpop.permute.xlu0 %713 }
 0x4e9   : > { %v719_v39 = vsel %vm468_vm2, %v714_v38, 0 }
 0x4ea   : > { %728 = vmatpush.bf16.msra.mxu3 %v719_v39 }
 0x4ec   : > { %v550_v41 = vpop.f32.mrf.mxu2 }
 0x4ed   : > { %v554_v42 = vpack.c.bf16 %v550_v41, %v550_v41  ;;  %979 = vmatmul.msk.bf16.vlgmr.msra.gmra.mxu3 %vm431_vm3, %v712_v40 }
 0x4ef   : > { %973 = vmatmul.msk.bf16.vlgmr.msrb.gmra.mxu0 %vm431_vm3, %v554_v42 }
 0x4f4   : > { %v552_v43 = vpop.f32.mrf.mxu2 }
 0x4fc   : > { %v649_v44 = vpop.f32.mrf.mxu2 }
 0x4fd   : > { %v653_v45 = vpack.c.bf16 %v649_v44, %v649_v44 }
 0x4ff   : > { %977 = vmatmul.msk.bf16.vlgmr.msra.gmra.mxu0 %vm431_vm3, %v653_v45 }
 0x504   : > { %v651_v46 = vpop.f32.mrf.mxu2 }
 0x56c   : > { %v572_v49 = vpop.f32.mrf.mxu0 }
 0x56d   : > { %v592_v54 = vadd.f32 %v1560_v2, %v572_v49  ;;  %v770_v2 = vadd.f32 %v1103_v3, %v769_v6 }
 0x56f   : > { %v772_v7 = vsel %vm771_vm5, %v1103_v3, %v770_v2 }
 0x570   : > { %v730_v50 = vpop.f32.mrf.mxu3 }
 0x571   : > { %v734_v51 = vpack.c.bf16 %v730_v50, %v730_v50 }
 0x573   : > { %980 = vmatmul.msk.bf16.vlgmr.msrb.gmra.mxu2 %vm431_vm3, %v734_v51 }
 0x574   : > { %v574_v52 = vpop.f32.mrf.mxu0 }
 0x578   : > { %v732_v53 = vpop.f32.mrf.mxu3 }
 0x57c   : > { %v671_v55 = vpop.f32.mrf.mxu0 }
 0x57d   : > { %v675_v56 = vadd.f32 %v671_v55, %v592_v54 }
 0x584   : > { %v673_v57 = vpop.f32.mrf.mxu0 }
 0x5f6   : > { %v752_v60 = vpop.f32.mrf.mxu2 }
 0x5f7   : > { %v756_v61 = vadd.f32 %v752_v60, %v675_v56 }
 0x5f9   : > { %v759_v62 = vadd.f32 %v758_v59, %v756_v61 }
 0x5fb   : > { %v763_v63 = vsel %vm389_vm0, %v759_v62, 0.0 }
 0x5fc   : > { %764 = vadd.xlane.f32.xlu2 %v763_v63 }
 0x5fe   : > { %v754_v0 = vpop.f32.mrf.mxu2 }
 0x66f   : > { %v765_v8 = vpop.xlane.xlu2 %764 }
 0x670   : > { %v773_v9 = vmul.f32 %v772_v7, %v765_v8 }
 0x672   : > { %v774_v10 = vsub.f32 %v759_v62, %v773_v9 }
 0x674   : > { %v775_v11 = vmul.f32 %v774_v10, %v774_v10 }
 0x676   : > { %v776_v12 = vsel %vm389_vm0, %v775_v11, 0.0 }
 0x677   : > { %777 = vadd.xlane.f32.xlu1 %v776_v12 }
 0x6ea   : > { %v778_v13 = vpop.xlane.xlu1 %777 }
 0x6eb   : > { %v779_v14 = vmul.f32 %v778_v13, %v772_v7 }
 0x6ed   : > { %v780_v15 = vadd.f32 1e-05, %v779_v14 }
 0x6ef   : > { %1104 = vrsqrt.f32 %v780_v15  ;;  %vm787_vm7 = vweird.f32 %v780_v15 }
 0x6f5   : > { %v1105_v16 = vpop.eup %1104 }
 0x6f6   : > { %v782_v17 = vmul.f32 %v1105_v16, %v780_v15  ;;  %vm788_vm6 = vweird.f32 %v1105_v16 }
 0x6f7   : > { %vm789_vm8 = vmor %vm787_vm7, %vm788_vm6 }
 0x6f8   : > { %v783_v18 = vmul.f32 %v1105_v16, %v782_v17 }
 0x6fa   : > { %v784_v19 = vmul.f32 0.5, %v783_v18 }
 0x6fc   : > { %v785_v20 = vsub.f32 1.5, %v784_v19 }
 0x6fe   : > { %v786_v21 = vmul.f32 %v1105_v16, %v785_v20 }
 0x700   : > { %v790_v23 = vsel %vm789_vm8, %v1105_v16, %v786_v21 }
 0x701   : > { %v791_v25 = vmul.f32 %v790_v23, %v774_v10 }
 0x703   : > { %v795_v26 = vmul.f32 %v1084_v22, %v791_v25 }
 0x705   : > { %v799_v27 = vadd.f32 %v1085_v24, %v795_v26 }
 0x707   : > { %v800_v28 = vpack.c.bf16 %v799_v27, %v799_v27 }
 0x709   : > { %802 = vst.msk [vmem:[%s366_s3] sm:$0xf] %vm407_vm1, %v800_v28 }
 0x70a   : > { %1265 = shalt.err (!%p1262_p13)
}
 0x70b   : > { %999 = dma.vmem_to_hbm [thread:$0]  (%p1464_p2), %s818_s0, 64, %s820_s4, %s804_s30  }
 0x70c PF: > { %s831_s16 = sand.u32 1, %s1314_s28   ;;  %p1016_p0 = pnand %p949_p6, %p1471_p5 }
 0x70d   : > { %s832_s17 = scalar_lea.sflag [#allocation9], %s831_s16 }
 0x70e   : > { %p1017_p4 = pneg %p1016_p0 }
 0x710   : > { %1309 = dma.done.wait (%p1017_p4), %s832_s17, 64  }
 0x711   : > { %1311 = vsyncadd (%p1017_p4), %s832_s17, 4294967232  ;;  %s35_s9 = sadd.s32 1, %s1334_s9   ;;  %s1659_s19 = sld [smem:[#allocation22_spill]] }
 0x712   : > { %p32_p7 = scmp.ge.s32.totalorder %s35_s9, 4   ;;  %s1660_s30 = sld [smem:[#allocation25_spill]] }
 0x713   : > { %s1661_s0 = sld [smem:[#allocation23_spill]]  ;;  %s1663_s28 = smov %s1318_s29 }
 0x714   : > { %s1662_s8 = sld [smem:[#allocation24_spill]]  ;;  %34 = sbr.rel (!%p32_p7) target bundleno = 16 (0x10), region = 118 }
 0x717   : > { %s1664_s29 = smov %s1659_s19 }
 0x719   :  { %838 = vsyncpa [#allocation8], 1 }
 0x71a   :  { %840 = vsyncpa [#allocation8 + $0x1], 1 }
 0x71b   :  { %841 = vsyncpa [#allocation11], 1 }
 0x71c   :  { %843 = vsyncpa [#allocation11 + $0x1], 1 }
 0x71d   :  { %844 = vsyncpa [#allocation14], 1 }
 0x71e   :  { %845 = vsyncpa [#allocation9], 1 }
 0x71f   :  { %847 = vsyncpa [#allocation9 + $0x1], 1 }

</bundles_post_ra>
